<compile_context>
chip_gen: v6e
topology: v6e:2x2x1
jax: 0.10.0
libtpu: 0.0.40
codegen_flags: <defaults>
</compile_context>

<pallas_src>
import functools

import jax
import jax.numpy as jnp
from jax.experimental import pallas as pl
from jax.experimental.pallas import tpu as pltpu


def _round_up(x, m):
    return ((x + m - 1) // m) * m


def gru_fc_kernel(x_ref, h_ref, wi_ref, wh_ref, fcw_ref, fcb_ref, out_ref, hnew_ref):
    """One GRU cell step (bias=False) fused with the fc head, on lane-padded operands.

    PyTorch GRU gate order / equations:
        r  = sigmoid(x W_ir^T + h W_hr^T)
        z  = sigmoid(x W_iz^T + h W_hz^T)
        n  = tanh   (x W_in^T + r * (h W_hn^T))
        h' = (1 - z) * n + z * h
        out = h' W_fc^T + b_fc
    Gate weight blocks are concatenated along the lane axis, each padded to HP (a multiple of
    128), so every gate slice below is vreg-aligned (no XLU lane shifts).  Pad lanes of h enter
    as exact zeros and stay exactly zero through the update, so the padded math is bit-identical
    to the unpadded reference.
    """
    x = x_ref[...]
    h = h_ref[...]
    hp = h_ref.shape[1]

    # Two fused matmuls over all three gates (gi and gh kept separate: n needs gh_n alone).
    gi = jnp.dot(x, wi_ref[...], preferred_element_type=jnp.float32)  # (B, 3*HP)
    gh = jnp.dot(h, wh_ref[...], preferred_element_type=jnp.float32)  # (B, 3*HP)

    r = jax.nn.sigmoid(gi[:, 0 * hp:1 * hp] + gh[:, 0 * hp:1 * hp])
    z = jax.nn.sigmoid(gi[:, 1 * hp:2 * hp] + gh[:, 1 * hp:2 * hp])
    n = jnp.tanh(gi[:, 2 * hp:3 * hp] + r * gh[:, 2 * hp:3 * hp])

    h_new = (1.0 - z) * n + z * h

    out_ref[...] = (jnp.dot(h_new, fcw_ref[...], preferred_element_type=jnp.float32)
                    + fcb_ref[...]).astype(out_ref.dtype)
    hnew_ref[...] = h_new.astype(hnew_ref.dtype)


def prepare_params(params, input_dim, hidden, output_dim):
    """Done ONCE at init: split PyTorch-layout GRU weights by gate, transpose, concatenate
    along a lane-padded (HP-per-gate) axis, and pre-pad the fc weight/bias to 128 lanes."""
    hp = _round_up(max(hidden, 128), 128)
    op = _round_up(max(output_dim, 128), 128)

    w_ih = params["w_ih"]  # (3H, input_dim), gate order (r, z, n)
    w_hh = params["w_hh"]  # (3H, hidden)

    wi = jnp.zeros((input_dim, 3 * hp), jnp.float32)
    wh = jnp.zeros((hp, 3 * hp), jnp.float32)
    for g in range(3):
        wi = wi.at[:, g * hp:g * hp + hidden].set(w_ih[g * hidden:(g + 1) * hidden].T)
        wh = wh.at[:hidden, g * hp:g * hp + hidden].set(w_hh[g * hidden:(g + 1) * hidden].T)

    fcw = jnp.zeros((hp, op), jnp.float32).at[:hidden, :output_dim].set(params["fc_w"].T)
    fcb = jnp.zeros((1, op), jnp.float32).at[0, :output_dim].set(params["fc_b"])

    return {"wi": wi, "wh": wh, "fcw": fcw, "fcb": fcb}


def pad_hidden(h0, hp):
    """(1, batch, hidden) -> lane-padded (batch, HP); pad lanes are exactly zero."""
    _, batch, hidden = h0.shape
    return jnp.zeros((batch, hp), jnp.float32).at[:, :hidden].set(
        h0.reshape(batch, hidden).astype(jnp.float32))


def unpad_hidden(h_padded, hidden):
    """Lane-padded (batch, HP) -> PyTorch-shaped (1, batch, hidden)."""
    batch = h_padded.shape[0]
    return h_padded[:, :hidden].reshape(1, batch, hidden)


def _gru_fc_call(days, h_padded, weights):
    """Core fused GRU-step + fc head.  h_padded is (batch, HP) with zero pad lanes."""
    batch = days.shape[0]
    hp = weights["wh"].shape[0]
    op = weights["fcw"].shape[1]

    vmem = pl.BlockSpec(memory_space=pltpu.MemorySpace.VMEM)
    out_pad, h_new_padded = pl.pallas_call(
        gru_fc_kernel,
        out_shape=(
            jax.ShapeDtypeStruct((batch, op), jnp.float32),   # lane-dense (>=128) output
            jax.ShapeDtypeStruct((batch, hp), jnp.float32),
        ),
        in_specs=[vmem] * 6,
        out_specs=(vmem, vmem),
        input_output_aliases={1: 1},  # reuse the padded hidden-state buffer in place
    )(days, h_padded, weights["wi"], weights["wh"], weights["fcw"], weights["fcb"])
    return out_pad, h_new_padded


@jax.jit
def rnn_classifier_step_padded(days, h_padded, weights):
    """Padded-carry step API: takes / returns the (batch, HP) hidden state directly, so a
    sequence driver pays no per-step pad/slice ops.  Pad lanes must enter as exact zeros
    (pad_hidden guarantees this); they then stay zero."""
    return _gru_fc_call(days, h_padded, weights)


@functools.partial(jax.jit, static_argnames=("hidden", "output_dim"))
def rnn_classifier_forward(days, h0, weights, *, hidden, output_dim):
    """PyTorch-equivalent forward.  days: (batch, input_dim) f32, h0: (1, batch, hidden) f32
    -> (out (batch, output_dim), hidden (1, batch, hidden)).  Entire path is one jit."""
    batch = days.shape[0]
    hp = weights["wh"].shape[0]

    h0_pad = pad_hidden(h0, hp)
    out_pad, h_new_pad = _gru_fc_call(days, h0_pad, weights)

    out = out_pad[:, :output_dim]
    hidden_new = unpad_hidden(h_new_pad, hidden)
    return out, hidden_new


def init_params(key, input_dim, hidden_dim, output_dim):
    k1, k2, k3, k4 = jax.random.split(key, 4)
    scale = 1.0 / jnp.sqrt(hidden_dim)
    return {
        # PyTorch GRU weight layout: (3*hidden, in_features), gate order (r, z, n)
        "w_ih": jax.random.uniform(k1, (3 * hidden_dim, input_dim),
                                   minval=-scale, maxval=scale, dtype=jnp.float32),
        "w_hh": jax.random.uniform(k2, (3 * hidden_dim, hidden_dim),
                                   minval=-scale, maxval=scale, dtype=jnp.float32),
        "fc_w": jax.random.uniform(k3, (output_dim, hidden_dim),
                                   minval=-scale, maxval=scale, dtype=jnp.float32),
        "fc_b": jax.random.uniform(k4, (output_dim,),
                                   minval=-scale, maxval=scale, dtype=jnp.float32),
    }


def reference_forward(days, h0, params):
    """Pure-JAX reference (same math, no Pallas, no padding)."""
    hidden = params["w_hh"].shape[1]
    x, h = days, h0.reshape(days.shape[0], hidden)
    gi = x @ params["w_ih"].T
    gh = h @ params["w_hh"].T
    r = jax.nn.sigmoid(gi[:, :hidden] + gh[:, :hidden])
    z = jax.nn.sigmoid(gi[:, hidden:2 * hidden] + gh[:, hidden:2 * hidden])
    n = jnp.tanh(gi[:, 2 * hidden:] + r * gh[:, 2 * hidden:])
    h_new = (1.0 - z) * n + z * h
    out = h_new @ params["fc_w"].T + params["fc_b"]
    return out, h_new.reshape(1, days.shape[0], hidden)


if __name__ == "__main__":
    # hidden_dim=49 matches the original script; batch is a multiple of 8 (sublane-aligned).
    batch, input_dim, hidden_dim, output_dim = 8, 16, 49, 4

    key = jax.random.PRNGKey(0)
    k_days, k_params = jax.random.split(key)
    days = jax.random.normal(k_days, (batch, input_dim), dtype=jnp.float32)
    h0 = jnp.zeros((1, batch, hidden_dim), dtype=jnp.float32)  # initHidden(batch)

    params = init_params(k_params, input_dim, hidden_dim, output_dim)
    weights = prepare_params(params, input_dim, hidden_dim, output_dim)  # once, at init

    # --- PyTorch-equivalent single forward (fully jitted) ------------------------------------
    out, hidden = rnn_classifier_forward(days, h0, weights,
                                         hidden=hidden_dim, output_dim=output_dim)
    jax.block_until_ready((out, hidden))

    out_ref, hidden_ref = reference_forward(days, h0, params)
    assert out.shape == (batch, output_dim)
    assert hidden.shape == (1, batch, hidden_dim)
    assert jnp.allclose(out, out_ref, atol=1e-5, rtol=1e-5)
    assert jnp.allclose(hidden, hidden_ref, atol=1e-5, rtol=1e-5)

    # --- Padded-carry multi-step demo (pad once, no per-step pad/slice) -----------------------
    hp = weights["wh"].shape[0]
    h_pad = pad_hidden(h0, hp)
    h_ref_seq = h0
    key_seq = jax.random.PRNGKey(1)
    for _ in range(3):
        key_seq, kx = jax.random.split(key_seq)
        x_t = jax.random.normal(kx, (batch, input_dim), dtype=jnp.float32)
        out_pad, h_pad = rnn_classifier_step_padded(x_t, h_pad, weights)
        out_ref_t, h_ref_seq = reference_forward(x_t, h_ref_seq, params)
        assert jnp.allclose(out_pad[:, :output_dim], out_ref_t, atol=1e-4, rtol=1e-4)
    jax.block_until_ready(h_pad)
    assert jnp.allclose(unpad_hidden(h_pad, hidden_dim), h_ref_seq, atol=1e-4, rtol=1e-4)

    print("KERNEL_OK")
</pallas_src>

<mosaic_0001>
module attributes {stable_mosaic.version = 11 : i64} {
  func.func @gru_fc_kernel(%arg0: memref<8x16xf32, #tpu.memory_space<vmem>>, %arg1: memref<8x128xf32, #tpu.memory_space<vmem>>, %arg2: memref<16x384xf32, #tpu.memory_space<vmem>>, %arg3: memref<128x384xf32, #tpu.memory_space<vmem>>, %arg4: memref<128x128xf32, #tpu.memory_space<vmem>>, %arg5: memref<1x128xf32, #tpu.memory_space<vmem>>, %arg6: memref<8x128xf32, #tpu.memory_space<vmem>>, %arg7: memref<8x128xf32, #tpu.memory_space<vmem>>) attributes {dimension_semantics = [], scalar_prefetch = 0 : i64, scratch_operands = 0 : i64, tpu.core_type = #tpu.core_type<tc>} {
    %c0 = arith.constant 0 : index
    %c0_0 = arith.constant 0 : index
    %0 = vector.load %arg0[%c0, %c0_0] : memref<8x16xf32, #tpu.memory_space<vmem>>, vector<8x16xf32>
    %c0_1 = arith.constant 0 : index
    %c0_2 = arith.constant 0 : index
    %1 = vector.load %arg1[%c0_1, %c0_2] : memref<8x128xf32, #tpu.memory_space<vmem>>, vector<8x128xf32>
    %c0_3 = arith.constant 0 : index
    %c0_4 = arith.constant 0 : index
    %2 = vector.load %arg2[%c0_3, %c0_4] : memref<16x384xf32, #tpu.memory_space<vmem>>, vector<16x384xf32>
    %cst = arith.constant dense<0.000000e+00> : vector<8x384xf32>
    %3 = tpu.matmul %0, %2, %cst {dimension_numbers = #tpu.dot_dimension_numbers<[1], [0], [0], [1], [0, 0, 1, 1], [], []>} : vector<8x16xf32>, vector<16x384xf32>, vector<8x384xf32> -> vector<8x384xf32>
    %c0_5 = arith.constant 0 : index
    %c0_6 = arith.constant 0 : index
    %4 = vector.load %arg3[%c0_5, %c0_6] : memref<128x384xf32, #tpu.memory_space<vmem>>, vector<128x384xf32>
    %cst_7 = arith.constant dense<0.000000e+00> : vector<8x384xf32>
    %5 = tpu.matmul %1, %4, %cst_7 {dimension_numbers = #tpu.dot_dimension_numbers<[1], [0], [0], [1], [0, 0, 1, 1], [], []>} : vector<8x128xf32>, vector<128x384xf32>, vector<8x384xf32> -> vector<8x384xf32>
    %6 = vector.extract_strided_slice %3 {offsets = [0, 0], sizes = [8, 128], strides = [1, 1]} : vector<8x384xf32> to vector<8x128xf32>
    %7 = vector.extract_strided_slice %5 {offsets = [0, 0], sizes = [8, 128], strides = [1, 1]} : vector<8x384xf32> to vector<8x128xf32>
    %8 = arith.addf %6, %7 : vector<8x128xf32>
    %9 = arith.negf %8 : vector<8x128xf32>
    %10 = math.exp %9 : vector<8x128xf32>
    %cst_8 = arith.constant 1.000000e+00 : f32
    %11 = vector.broadcast %cst_8 : f32 to vector<8x128xf32>
    %12 = arith.addf %11, %10 : vector<8x128xf32>
    %13 = arith.divf %11, %12 : vector<8x128xf32>
    %14 = vector.extract_strided_slice %3 {offsets = [0, 128], sizes = [8, 128], strides = [1, 1]} : vector<8x384xf32> to vector<8x128xf32>
    %15 = vector.extract_strided_slice %5 {offsets = [0, 128], sizes = [8, 128], strides = [1, 1]} : vector<8x384xf32> to vector<8x128xf32>
    %16 = arith.addf %14, %15 : vector<8x128xf32>
    %17 = arith.negf %16 : vector<8x128xf32>
    %18 = math.exp %17 : vector<8x128xf32>
    %cst_9 = arith.constant 1.000000e+00 : f32
    %19 = vector.broadcast %cst_9 : f32 to vector<8x128xf32>
    %20 = arith.addf %19, %18 : vector<8x128xf32>
    %21 = arith.divf %19, %20 : vector<8x128xf32>
    %22 = vector.extract_strided_slice %3 {offsets = [0, 256], sizes = [8, 128], strides = [1, 1]} : vector<8x384xf32> to vector<8x128xf32>
    %23 = vector.extract_strided_slice %5 {offsets = [0, 256], sizes = [8, 128], strides = [1, 1]} : vector<8x384xf32> to vector<8x128xf32>
    %24 = arith.mulf %13, %23 : vector<8x128xf32>
    %25 = arith.addf %22, %24 : vector<8x128xf32>
    %26 = math.tanh %25 : vector<8x128xf32>
    %cst_10 = arith.constant 1.000000e+00 : f32
    %27 = vector.broadcast %cst_10 : f32 to vector<8x128xf32>
    %28 = arith.subf %27, %21 : vector<8x128xf32>
    %29 = arith.mulf %28, %26 : vector<8x128xf32>
    %30 = arith.mulf %21, %1 : vector<8x128xf32>
    %31 = arith.addf %29, %30 : vector<8x128xf32>
    %c0_11 = arith.constant 0 : index
    %c0_12 = arith.constant 0 : index
    %32 = vector.load %arg4[%c0_11, %c0_12] : memref<128x128xf32, #tpu.memory_space<vmem>>, vector<128x128xf32>
    %cst_13 = arith.constant dense<0.000000e+00> : vector<8x128xf32>
    %33 = tpu.matmul %31, %32, %cst_13 {dimension_numbers = #tpu.dot_dimension_numbers<[1], [0], [0], [1], [0, 0, 1, 1], [], []>} : vector<8x128xf32>, vector<128x128xf32>, vector<8x128xf32> -> vector<8x128xf32>
    %c0_14 = arith.constant 0 : index
    %c0_15 = arith.constant 0 : index
    %34 = vector.load %arg5[%c0_14, %c0_15] : memref<1x128xf32, #tpu.memory_space<vmem>>, vector<1x128xf32>
    %35 = vector.broadcast %34 : vector<1x128xf32> to vector<8x128xf32>
    %36 = arith.addf %33, %35 : vector<8x128xf32>
    %c0_16 = arith.constant 0 : index
    %c0_17 = arith.constant 0 : index
    %37 = vector.load %arg6[%c0_16, %c0_17] : memref<8x128xf32, #tpu.memory_space<vmem>>, vector<8x128xf32>
    tpu.vector_store %arg6[%c0_16, %c0_17], %36 {strides = array<i32>} : memref<8x128xf32, #tpu.memory_space<vmem>>, vector<8x128xf32>,
    %c0_18 = arith.constant 0 : index
    %c0_19 = arith.constant 0 : index
    %38 = vector.load %arg7[%c0_18, %c0_19] : memref<8x128xf32, #tpu.memory_space<vmem>>, vector<8x128xf32>
    tpu.vector_store %arg7[%c0_18, %c0_19], %31 {strides = array<i32>} : memref<8x128xf32, #tpu.memory_space<vmem>>, vector<8x128xf32>,
    return
  }
}

</mosaic_0001>

<bundles_post_ra>
// kernel: rnn_classifier_forward.1
= control target key start
LH: loop header
LB: loop body
LE: loop exit
PB: predicated region body
PF: predicated region fallthrough
CT: control target
= control target key end

     0   :  { %13 = vsyncpa [#allocation3], 0  ;;  %s858_s0 = inlined_call_operand.vmem [shape: f32[8,16], index: 0, kind: input, shape index: {}]   ;;  %s859_s1 = inlined_call_operand.vmem [shape: f32[8,128], index: 1, kind: input, shape index: {}, may-alias: {1,7}]   ;;  %s860_s2 = inlined_call_operand.hbm [shape: f32[16,384], index: 2, kind: input, shape index: {}]   ;;  %s861_s3 = inlined_call_operand.hbm [shape: f32[128,384], index: 3, kind: input, shape index: {}]   ;;  %s862_s4 = inlined_call_operand.hbm [shape: f32[128,128], index: 4, kind: input, shape index: {}]   ;;  %s863_s5 = inlined_call_operand.vmem [shape: f32[1,128], index: 5, kind: input, shape index: {}]   ;;  %s864_s6 = inlined_call_operand.vmem [shape: f32[8,128], index: 6, kind: output, shape index: {0}]   ;;  %s865_s7 = inlined_call_operand.vmem [shape: f32[8,128], index: 7, kind: output, shape index: {1}, may-alias: {1,7}]  }
   0x1   :  { %14 = vsyncpa [#allocation5], 0  ;;  %s736_s24 = smov [#allocation4]   ;;  %s737_s26 = smov [#allocation2]  }
   0x2   :  { %s36_s25 = sshll.u32 %s736_s24, 4  ;;  %s24_s27 = sshll.u32 %s737_s26, 4  ;;  %s37_s25 = int_to_ptr.vmem [resolvable:$true] %s36_s25  ;;  %s25_s27 = int_to_ptr.vmem [resolvable:$true] %s24_s27 }
   0x3   :  { %s680_s28 = scalar_lea.vmem %s37_s25, 6144  ;;  %p685_p1 = scmp.lt.s32.totalorder %s37_s25, %s37_s25 }
   0x4   :  { %p681_p0 = scmp.ne.s32.totalorder %s37_s25, %s680_s28  ;;  %p686_p2 = scmp.lt.s32.totalorder %s680_s28, %s680_s28 }
   0x6   :  { %p687_p3 = por %p686_p2, %p685_p1 }
   0x8   :  { %p688_p4 = pnand %p687_p3, %p681_p0 }
   0xa   :  { %691 = shalt.err (!%p688_p4)
}
   0xb   :  { %s738_s29 = smov 384   ;;  %s739_s30 = smov 24  }
   0xc   :  { %42 = dma.hbm_to_vmem [thread:$0]  %s861_s3, 6144, %s37_s25, [#allocation5], %s738_s29, %s738_s29, %s739_s30  }
   0xd   :  { %s700_s10 = scalar_lea.vmem %s25_s27, 768  ;;  %p705_p6 = scmp.lt.s32.totalorder %s25_s27, %s25_s27 }
   0xe   :  { %p701_p5 = scmp.ne.s32.totalorder %s25_s27, %s700_s10  ;;  %p706_p7 = scmp.lt.s32.totalorder %s700_s10, %s700_s10 }
  0x10   :  { %p707_p8 = por %p706_p7, %p705_p6 }
  0x12   :  { %p708_p9 = pnand %p707_p8, %p701_p5 }
  0x14   :  { %711 = shalt.err (!%p708_p9)
}
  0x15   :  { %30 = dma.hbm_to_vmem [thread:$0]  %s860_s2, 768, %s25_s27, [#allocation3], %s738_s29, %s738_s29, %s739_s30  }
  0x16   :  { %s740_s13 = smov [#allocation6]  }
  0x17   :  { %s48_s14 = sshll.u32 %s740_s13, 4  ;;  %s49_s14 = int_to_ptr.vmem [resolvable:$true] %s48_s14 }
  0x18   :  { %s720_s15 = scalar_lea.vmem %s49_s14, 2048  ;;  %p725_p11 = scmp.lt.s32.totalorder %s49_s14, %s49_s14 }
  0x19   :  { %p721_p10 = scmp.ne.s32.totalorder %s49_s14, %s720_s15  ;;  %p726_p12 = scmp.lt.s32.totalorder %s720_s15, %s720_s15 }
  0x1b   :  { %p727_p13 = por %p726_p12, %p725_p11 }
  0x1d   :  { %p728_p0 = pnand %p727_p13, %p721_p10 }
  0x1f   :  { %731 = shalt.err (!%p728_p0)
}
  0x20   :  { %s741_s3 = smov 128   ;;  %s742_s16 = smov 8  }
  0x21   :  { %54 = dma.hbm_to_vmem [thread:$0]  %s862_s4, 2048, %s49_s14, [#allocation5], %s741_s3, %s741_s3, %s742_s16  }
  0x22   :  { %732 = dma.done.wait [#allocation3], 768  }
  0x23   :  { %733 = vsyncadd [#allocation3], 4294966528 }
  0x24   :  { %734 = dma.done.wait [#allocation5], 8192  }
  0x25   :  { %735 = vsyncadd [#allocation5], 4294959104  ;;  %v743_v0 = vmov 0.0   ;;  %v265_v1 = vld [vmem:[#allocation4 + $0x170] sm:$0xff]  ;;  %v264_v2 = vld [vmem:[#allocation4 + $0x168] sm:$0xff]  ;;  %vm74_vm0 = vcmask 130048  }
  0x26   :  { %142 = vmatprep.mubr.f32.mxu1 %v743_v0  ;;  %331 = vmatprep.mubr.f32.mxu0 %v743_v0  ;;  %v262_v3 = vld [vmem:[#allocation4 + $0x158] sm:$0xff]  ;;  %v261_v4 = vld [vmem:[#allocation4 + $0x150] sm:$0xff]  ;;  %v259_v5 = vld [vmem:[#allocation4 + $0x140] sm:$0xff]  ;;  %vm744_vm1 = vmmov 0  }
  0x27   :  { %267 = vmatprep.subr.mxu0 %v265_v1  ;;  %v258_v6 = vld [vmem:[#allocation4 + $0x138] sm:$0xff]  ;;  %v256_v7 = vld [vmem:[#allocation4 + $0x128] sm:$0xff]  ;;  %v255_v8 = vld [vmem:[#allocation4 + $0x120] sm:$0xff] }
  0x28   :  { %268 = vmatpush1.msra.mxu0 %v264_v2  ;;  %v253_v9 = vld [vmem:[#allocation4 + $0x110] sm:$0xff]  ;;  %v252_v10 = vld [vmem:[#allocation4 + $0x108] sm:$0xff]  ;;  %v250_v11 = vld [vmem:[#allocation4 + $0xf8] sm:$0xff] }
  0x29   :  { %269 = vmatprep.subr.mxu0 %v262_v3  ;;  %v72_v12 = vld [vmem:[#allocation2 + $0x20] sm:$0xff]  ;;  %v71_v13 = vld [vmem:[#allocation2 + $0x18] sm:$0xff]  ;;  %v69_v15 = vld [vmem:[#allocation2 + $0x8] sm:$0xff] }
  0x2a   :  { %270 = vmatpush1.msra.mxu0 %v261_v4  ;;  %v249_v14 = vld [vmem:[#allocation4 + $0xf0] sm:$0xff]  ;;  %106 = vmatprep.subr.mxu1 %v72_v12  ;;  %v247_v16 = vld [vmem:[#allocation4 + $0xe0] sm:$0xff]  ;;  %v246_v18 = vld [vmem:[#allocation4 + $0xd8] sm:$0xff] }
  0x2b   :  { %271 = vmatprep.subr.mxu0 %v259_v5  ;;  %107 = vmatpush1.msra.mxu1 %v71_v13  ;;  %v68_v17 = vld [vmem:[#allocation2] sm:$0xff]  ;;  %v244_v20 = vld [vmem:[#allocation4 + $0xc8] sm:$0xff]  ;;  %v73_v21 = vld [vmem:[#allocation2 + $0x28] sm:$0xff] }
  0x2c   :  { %272 = vmatpush1.msra.mxu0 %v258_v6  ;;  %108 = vmatprep.subr.mxu1 %v69_v15  ;;  %v66_v19 = vld [vmem:[%s858_s0] sm:$0xff]  ;;  %v243_v22 = vld [vmem:[#allocation4 + $0xc0] sm:$0xff]  ;;  %v240_v25 = vld [vmem:[#allocation4 + $0xa8] sm:$0xff] }
  0x2d   :  { %273 = vmatprep.subr.mxu0 %v256_v7  ;;  %109 = vmatpush1.msra.mxu1 %v68_v17  ;;  %v241_v23 = vld [vmem:[#allocation4 + $0xb0] sm:$0xff]  ;;  %v70_v24 = vld [vmem:[#allocation2 + $0x10] sm:$0xff]  ;;  %v238_v26 = vld [vmem:[#allocation4 + $0x98] sm:$0xff] }
  0x2e   :  { %274 = vmatpush1.msra.mxu0 %v255_v8  ;;  %576 = vmatprep.subr.mxu1 %v743_v0  ;;  %v237_v27 = vld [vmem:[#allocation4 + $0x90] sm:$0xff]  ;;  %v235_v28 = vld [vmem:[#allocation4 + $0x80] sm:$0xff]  ;;  %v266_v29 = vld [vmem:[#allocation4 + $0x178] sm:$0xff] }
  0x2f   :  { %275 = vmatprep.subr.mxu0 %v253_v9  ;;  %534 = vmatmul.mubr.msk.f32.vlgmr.msra.gmra.mxu1 %vm74_vm0, %v66_v19  ;;  %v234_v30 = vld [vmem:[#allocation4 + $0x78] sm:$0xff]  ;;  %v232_v31 = vld [vmem:[#allocation4 + $0x68] sm:$0xff]  ;;  %v263_v32 = vld [vmem:[#allocation4 + $0x160] sm:$0xff] }
  0x30   :  { %276 = vmatpush1.msra.mxu0 %v252_v10  ;;  %577 = vmatpush3.msra.mxu1 %v73_v21  ;;  %v231_v33 = vld [vmem:[#allocation4 + $0x60] sm:$0xff]  ;;  %v229_v34 = vld [vmem:[#allocation4 + $0x50] sm:$0xff]  ;;  %v260_v35 = vld [vmem:[#allocation4 + $0x148] sm:$0xff] }
  0x31   :  { %277 = vmatprep.subr.mxu0 %v250_v11  ;;  %578 = vmatprep.subr.mxu1 %v743_v0  ;;  %v228_v36 = vld [vmem:[#allocation4 + $0x48] sm:$0xff]  ;;  %v226_v37 = vld [vmem:[#allocation4 + $0x38] sm:$0xff]  ;;  %v257_v38 = vld [vmem:[#allocation4 + $0x130] sm:$0xff] }
  0x32   :  { %278 = vmatpush1.msra.mxu0 %v249_v14  ;;  %579 = vmatpush3.msra.mxu1 %v70_v24  ;;  %v225_v39 = vld [vmem:[#allocation4 + $0x30] sm:$0xff]  ;;  %v223_v40 = vld [vmem:[#allocation4 + $0x20] sm:$0xff]  ;;  %v254_v41 = vld [vmem:[#allocation4 + $0x118] sm:$0xff] }
  0x33   :  { %279 = vmatprep.subr.mxu0 %v247_v16  ;;  %580 = vmatprep.mubr.msk.f32.mxu1 %vm744_vm1, %v743_v0  ;;  %v222_v42 = vld [vmem:[#allocation4 + $0x18] sm:$0xff]  ;;  %v220_v43 = vld [vmem:[#allocation4 + $0x8] sm:$0xff]  ;;  %v251_v44 = vld [vmem:[#allocation4 + $0x100] sm:$0xff] }
  0x34   :  { %280 = vmatpush1.msra.mxu0 %v246_v18  ;;  %583 = vmatprep.subr.mxu1 %v743_v0  ;;  %v219_v45 = vld [vmem:[#allocation4] sm:$0xff]  ;;  %v813_v46 = vld [vmem:[%s859_s1] sm:$0xff]  ;;  %v248_v47 = vld [vmem:[#allocation4 + $0xe8] sm:$0xff] }
  0x35   :  { %281 = vmatprep.subr.mxu0 %v244_v20  ;;  %581 = vmatmul.mubr.msk.f32.vlgmr.msra.gmra.mxu1 %vm74_vm0, %v66_v19  ;;  %v245_v48 = vld [vmem:[#allocation4 + $0xd0] sm:$0xff]  ;;  %v242_v49 = vld [vmem:[#allocation4 + $0xb8] sm:$0xff]  ;;  %v239_v50 = vld [vmem:[#allocation4 + $0xa0] sm:$0xff] }
  0x36   :  { %282 = vmatpush1.msra.mxu0 %v243_v22  ;;  %584 = vmatpush3.msra.mxu1 %v266_v29  ;;  %v236_v51 = vld [vmem:[#allocation4 + $0x88] sm:$0xff]  ;;  %v233_v52 = vld [vmem:[#allocation4 + $0x70] sm:$0xff]  ;;  %v230_v53 = vld [vmem:[#allocation4 + $0x58] sm:$0xff] }
  0x37   :  { %283 = vmatprep.subr.mxu0 %v241_v23  ;;  %585 = vmatprep.subr.mxu1 %v743_v0  ;;  %v227_v54 = vld [vmem:[#allocation4 + $0x40] sm:$0xff]  ;;  %v224_v55 = vld [vmem:[#allocation4 + $0x28] sm:$0xff]  ;;  %v221_v56 = vld [vmem:[#allocation4 + $0x10] sm:$0xff] }
  0x38   :  { %284 = vmatpush1.msra.mxu0 %v240_v25  ;;  %586 = vmatpush3.msra.mxu1 %v263_v32  ;;  %v444_v57 = vld [vmem:[#allocation6 + $0x78] sm:$0xff]  ;;  %v443_v58 = vld [vmem:[#allocation6 + $0x70] sm:$0xff]  ;;  %v442_v59 = vld [vmem:[#allocation6 + $0x68] sm:$0xff] }
  0x39   :  { %285 = vmatprep.subr.mxu0 %v238_v26  ;;  %587 = vmatprep.subr.mxu1 %v743_v0  ;;  %v441_v60 = vld [vmem:[#allocation6 + $0x60] sm:$0xff]  ;;  %v440_v61 = vld [vmem:[#allocation6 + $0x58] sm:$0xff]  ;;  %v439_v62 = vld [vmem:[#allocation6 + $0x50] sm:$0xff] }
  0x3a   :  { %286 = vmatpush1.msra.mxu0 %v237_v27  ;;  %588 = vmatpush3.msra.mxu1 %v260_v35  ;;  %v438_v63 = vld [vmem:[#allocation6 + $0x48] sm:$0xff]  ;;  %v437_v1 = vld [vmem:[#allocation6 + $0x40] sm:$0xff]  ;;  %v436_v2 = vld [vmem:[#allocation6 + $0x38] sm:$0xff] }
  0x3b   :  { %287 = vmatprep.subr.mxu0 %v235_v28  ;;  %589 = vmatprep.subr.mxu1 %v743_v0  ;;  %v435_v3 = vld [vmem:[#allocation6 + $0x30] sm:$0xff]  ;;  %v434_v4 = vld [vmem:[#allocation6 + $0x28] sm:$0xff]  ;;  %v433_v5 = vld [vmem:[#allocation6 + $0x20] sm:$0xff] }
  0x3c   :  { %288 = vmatpush1.msra.mxu0 %v234_v30  ;;  %590 = vmatpush3.msra.mxu1 %v257_v38  ;;  %v432_v6 = vld [vmem:[#allocation6 + $0x18] sm:$0xff]  ;;  %v431_v7 = vld [vmem:[#allocation6 + $0x10] sm:$0xff]  ;;  %v430_v8 = vld [vmem:[#allocation6 + $0x8] sm:$0xff] }
  0x3d   :  { %289 = vmatprep.subr.mxu0 %v232_v31  ;;  %591 = vmatprep.subr.mxu1 %v743_v0  ;;  %v429_v9 = vld [vmem:[#allocation6] sm:$0xff] }
  0x3e   :  { %290 = vmatpush1.msra.mxu0 %v231_v33  ;;  %592 = vmatpush3.msra.mxu1 %v254_v41 }
  0x3f   :  { %291 = vmatprep.subr.mxu0 %v229_v34  ;;  %593 = vmatprep.subr.mxu1 %v743_v0  ;;  %v538_v34 = vld [vmem:[%s863_s5] ss:$0 sm:$0xff] }
  0x40   :  { %292 = vmatpush1.msra.mxu0 %v228_v36  ;;  %594 = vmatpush3.msra.mxu1 %v251_v44 }
  0x41   :  { %293 = vmatprep.subr.mxu0 %v226_v37  ;;  %595 = vmatprep.subr.mxu1 %v743_v0 }
  0x42   :  { %294 = vmatpush1.msra.mxu0 %v225_v39  ;;  %596 = vmatpush3.msra.mxu1 %v248_v47 }
  0x43   :  { %295 = vmatprep.subr.mxu0 %v223_v40  ;;  %597 = vmatprep.subr.mxu1 %v743_v0 }
  0x44   :  { %296 = vmatpush1.msra.mxu0 %v222_v42  ;;  %615 = vmatprep.mubr.msk.f32.mxu1 %vm744_vm1, %v743_v0 }
  0x45   :  { %297 = vmatprep.subr.mxu0 %v220_v43  ;;  %598 = vmatpush3.msra.mxu1 %v245_v48 }
  0x46   :  { %298 = vmatpush1.msra.mxu0 %v219_v45  ;;  %599 = vmatprep.subr.mxu1 %v743_v0 }
  0x47   :  { %332 = vmatmul.mubr.f32.vlgmr.msra.gmra.mxu0 %v813_v46  ;;  %618 = vmatprep.subr.mxu0 %v743_v0 }
  0x48   :  { %650 = vmatprep.mubr.msk.f32.mxu0 %vm744_vm1, %v743_v0  ;;  %600 = vmatpush3.msra.mxu1 %v242_v49 }
  0x49   :  { %601 = vmatprep.subr.mxu1 %v743_v0  ;;  %619 = vmatpush3.msra.mxu0 %v444_v57 }
  0x4a   :  { %602 = vmatpush3.msra.mxu1 %v239_v50  ;;  %620 = vmatprep.subr.mxu0 %v743_v0 }
  0x4b   :  { %603 = vmatprep.subr.mxu1 %v743_v0  ;;  %621 = vmatpush3.msra.mxu0 %v443_v58 }
  0x4c   :  { %604 = vmatpush3.msra.mxu1 %v236_v51  ;;  %622 = vmatprep.subr.mxu0 %v743_v0 }
  0x4d   :  { %605 = vmatprep.subr.mxu1 %v743_v0  ;;  %623 = vmatpush3.msra.mxu0 %v442_v59 }
  0x4e   :  { %606 = vmatpush3.msra.mxu1 %v233_v52  ;;  %624 = vmatprep.subr.mxu0 %v743_v0 }
  0x4f   :  { %607 = vmatprep.subr.mxu1 %v743_v0  ;;  %625 = vmatpush3.msra.mxu0 %v441_v60 }
  0x50   :  { %608 = vmatpush3.msra.mxu1 %v230_v53  ;;  %626 = vmatprep.subr.mxu0 %v743_v0 }
  0x51   :  { %609 = vmatprep.subr.mxu1 %v743_v0  ;;  %627 = vmatpush3.msra.mxu0 %v440_v61 }
  0x52   :  { %610 = vmatpush3.msra.mxu1 %v227_v54  ;;  %628 = vmatprep.subr.mxu0 %v743_v0 }
  0x53   :  { %611 = vmatprep.subr.mxu1 %v743_v0  ;;  %629 = vmatpush3.msra.mxu0 %v439_v62 }
  0x54   :  { %612 = vmatpush3.msra.mxu1 %v224_v55  ;;  %630 = vmatprep.subr.mxu0 %v743_v0 }
  0x55   :  { %613 = vmatprep.subr.mxu1 %v743_v0  ;;  %631 = vmatpush3.msra.mxu0 %v438_v63 }
  0x56   :  { %614 = vmatpush3.msra.mxu1 %v221_v56  ;;  %632 = vmatprep.subr.mxu0 %v743_v0 }
  0x57   :  { %616 = vmatmul.mubr.f32.vlgmr.msra.gmra.mxu1 %v813_v46  ;;  %633 = vmatpush3.msra.mxu0 %v437_v1 }
  0x58   :  { %634 = vmatprep.subr.mxu0 %v743_v0 }
  0x59   :  { %635 = vmatpush3.msra.mxu0 %v436_v2 }
  0x5a   :  { %636 = vmatprep.subr.mxu0 %v743_v0 }
  0x5b   :  { %637 = vmatpush3.msra.mxu0 %v435_v3 }
  0x5c   :  { %638 = vmatprep.subr.mxu0 %v743_v0 }
  0x5d   :  { %639 = vmatpush3.msra.mxu0 %v434_v4 }
  0x5e   :  { %640 = vmatprep.subr.mxu0 %v743_v0 }
  0x5f   :  { %641 = vmatpush3.msra.mxu0 %v433_v5 }
  0x60   :  { %642 = vmatprep.subr.mxu0 %v743_v0 }
  0x61   :  { %643 = vmatpush3.msra.mxu0 %v432_v6 }
  0x62   :  { %644 = vmatprep.subr.mxu0 %v743_v0 }
  0x63   :  { %645 = vmatpush3.msra.mxu0 %v431_v7 }
  0x64   :  { %646 = vmatprep.subr.mxu0 %v743_v0 }
  0x65   :  { %647 = vmatpush3.msra.mxu0 %v430_v8 }
  0x66   :  { %648 = vmatprep.subr.mxu0 %v743_v0 }
  0x67   :  { %649 = vmatpush3.msra.mxu0 %v429_v9 }
  0xef   :  { %v144_v10 = vpop.f32.mrf.mxu1 }
  0xf1   :  { %v146_v11 = vpop.f32.mrf.mxu1 }
  0xf5   :  { %v215_v12 = vpop.f32.mrf.mxu1 }
  0xf7   :  { %v582_v13 = vpop.f32.mrf.mxu1 }
 0x107   :  { %v333_v14 = vpop.f32.mrf.mxu0 }
 0x108   :  { %v408_v15 = vadd.f32 %v333_v14, %v144_v10 }
 0x109   :  { %v335_v17 = vpop.f32.mrf.mxu0 }
 0x10a   :  { %v536_v16 = vmul.f32 -1.442695, %v408_v15  ;;  %v415_v18 = vadd.f32 %v335_v17, %v146_v11 }
 0x10c   :  { %662 = vpow2.f32 %v536_v16  ;;  %v537_v19 = vmul.f32 -1.442695, %v415_v18 }
 0x10e   :  { %664 = vpow2.f32 %v537_v19 }
 0x117   :  { %v404_v22 = vpop.f32.mrf.mxu1 }
 0x119   :  { %v663_v20 = vpop.eup %662  ;;  %v617_v23 = vpop.f32.mrf.mxu1 }
 0x11a   :  { %v412_v21 = vadd.f32 1.0, %v663_v20 }
 0x11b   :  { %v665_v24 = vpop.eup %664 }
 0x11c   :  { %666 = vrcp.f32 %v412_v21  ;;  %v419_v0 = vadd.f32 1.0, %v665_v24 }
 0x11e   :  { %668 = vrcp.f32 %v419_v0 }
 0x129   :  { %v667_v25 = vpop.eup %666 }
 0x12a   :  { %v422_v26 = vmul.f32 %v667_v25, %v404_v22 }
 0x12b   :  { %v669_v28 = vpop.eup %668 }
 0x12c   :  { %v423_v27 = vadd.f32 %v422_v26, %v215_v12  ;;  %v425_v29 = vsub.f32 1.0, %v669_v28  ;;  %v427_v32 = vmul.f32 %v669_v28, %v813_v46 }
 0x12e   :  { %670 = vtanh.f32 %v423_v27 }
 0x13b   :  { %v671_v30 = vpop.eup %670 }
 0x13c   :  { %v426_v31 = vmul.f32 %v671_v30, %v425_v29 }
 0x13e   :  { %v428_v33 = vadd.f32 %v427_v32, %v426_v31 }
 0x140   :  { %651 = vmatmul.mubr.f32.vlgmr.msra.gmra.mxu0 %v428_v33  ;;  %523 = vst [vmem:[%s865_s7] sm:$0xff] %v428_v33 }
 0x200   :  { %v518_v35 = vpop.f32.mrf.mxu0 }
 0x201   :  { %v519_v36 = vadd.f32 %v538_v34, %v518_v35 }
 0x202   :  { %v652_v37 = vpop.f32.mrf.mxu0 }
 0x203   :  { %522 = vst [vmem:[%s864_s6] sm:$0xff] %v519_v36 }
 0x204   :  { %532 = vsyncpa [#allocation3], 1 }
 0x205   :  { %533 = vsyncpa [#allocation5], 1 }

</bundles_post_ra>
